<compile_context>
chip_gen: v7x
topology: tpu7x:2x2x1
jax: 0.10.0
libtpu: 0.0.40
codegen_flags: <defaults>
</compile_context>

<pallas_src>
import math

import jax
import jax.numpy as jnp
from jax.experimental import pallas as pl
from jax.experimental.pallas import tpu as pltpu

IN_FEATURES = 1152          # fixed by the module: nn.Linear(1152, projection_dim)
PROJECTION_DIM = 128


def patch_encoder_kernel(x_ref, w_ref, pos_ref, o_ref):
    # x_ref:   (TILE_M, K)  f32 tile of flattened patches (cast to bf16 here)
    # w_ref:   (K, N)       bf16 weight (pre-transposed), constant block -> VMEM-resident
    # pos_ref: (TILE_M, N)  f32 position embedding with the Linear bias folded in
    # o_ref:   (TILE_M, N)
    x_bf16 = x_ref[...].astype(jnp.bfloat16)                 # in-kernel cast (VPU slack)
    proj = jnp.dot(x_bf16, w_ref[...],
                   preferred_element_type=jnp.float32)       # MXU, f32 accumulate
    o_ref[...] = (proj + pos_ref[...]).astype(o_ref.dtype)   # f32 add, cast on store


def prepare_patch_encoder_params(weight, bias, pos_emb,
                                 compute_dtype=jnp.bfloat16):
    """One-time (init) parameter preparation — NOT in the per-call path.
    weight: (N, K) nn.Linear layout; bias: (N,); pos_emb: (1, P, N).
    Returns (w_t, pos_plus_bias) = ((K, N) compute-dtype weight,
                                    (P, N) f32 pos table with bias folded in)."""
    w_t = jnp.asarray(weight).T.astype(compute_dtype)                   # (K, N)
    pos_plus_bias = (jnp.asarray(pos_emb)[0]
                     + jnp.asarray(bias)[None, :]).astype(jnp.float32)  # (P, N)
    return w_t, pos_plus_bias


def _pick_tile_m(M, P, target):
    """Rows per grid step over the flattened (B * num_patches) axis.

    Invariants: TILE_M is a multiple of P (so a single pre-tiled pos block with
    a constant index_map is correct for every batch-aligned grid step), and it
    is either equal to M (full array dim -> always a legal block shape) or a
    multiple of 16 (satisfies the (8,128) sublane rule with bf16 headroom).
    M need NOT be divisible by TILE_M: the grid uses cdiv and Pallas masks the
    partial last block."""
    if M <= target:
        return M                                  # one full block
    unit = math.lcm(P, 16)
    if unit >= M:
        return M
    if unit >= target:
        return unit                               # one aligned patch-group per step
    return (target // unit) * unit


def _vmem_limit_bytes(tile_m, K, N, out_bytes):
    """Scoped-VMEM request: estimated double-buffered footprint + headroom,
    clamped to [32 MiB, 48 MiB] (fits all of v5e/v6e/v7x physical VMEM)."""
    est = 2 * tile_m * K * 4          # streamed f32 x tiles (double-buffered)
    est += 2 * K * N * 2              # bf16 weight
    est += 2 * tile_m * N * 4         # f32 pos+bias block
    est += 2 * tile_m * N * out_bytes # output tiles
    return int(min(48 * 2**20, max(32 * 2**20, est + (8 * 2**20))))


def patch_encoder(patches, w_t, pos_plus_bias, *, tile_m=2048, out_dtype=None):
    """patches: (B, P, K) f32; w_t: (K, N) bf16 (from prepare_patch_encoder_params);
    pos_plus_bias: (P, N) f32.  Returns (B, P, N) in `out_dtype`
    (default: patches.dtype).  Pass out_dtype=jnp.bfloat16 if downstream
    accepts bf16 to halve output HBM writes."""
    B, P, K = patches.shape
    N = w_t.shape[1]
    M = B * P
    out_dtype = patches.dtype if out_dtype is None else out_dtype

    TILE_M = _pick_tile_m(M, P, tile_m)
    grid_m = pl.cdiv(M, TILE_M)

    # Flatten (B, P) -> M: collapsing contiguous leading dims, no data movement,
    # and NO dtype cast here (the bf16 cast happens inside the kernel).
    x2 = patches.reshape(M, K)

    # Pre-tile the bias-folded pos table to one (TILE_M, N) block; because
    # TILE_M % P == 0 and every tile start is batch-aligned, the same block is
    # correct for every grid step -> constant index_map, VMEM-resident,
    # DMA'd only once.
    pos_tile = jnp.tile(pos_plus_bias, (TILE_M // P, 1)).astype(jnp.float32)

    vmem_limit = _vmem_limit_bytes(TILE_M, K, N, jnp.dtype(out_dtype).itemsize)

    out2 = pl.pallas_call(
        patch_encoder_kernel,
        out_shape=jax.ShapeDtypeStruct((M, N), out_dtype),
        grid_spec=pltpu.PrefetchScalarGridSpec(
            num_scalar_prefetch=0,
            grid=(grid_m,),
            in_specs=[
                pl.BlockSpec((TILE_M, K), lambda i: (i, 0)),   # streamed patches
                pl.BlockSpec((K, N), lambda i: (0, 0)),        # weight (resident)
                pl.BlockSpec((TILE_M, N), lambda i: (0, 0)),   # pos+bias (resident)
            ],
            out_specs=pl.BlockSpec((TILE_M, N), lambda i: (i, 0)),
        ),
        compiler_params=pltpu.CompilerParams(
            dimension_semantics=("parallel",),
            vmem_limit_bytes=vmem_limit),
    )(x2, w_t, pos_tile)

    return out2.reshape(B, P, N)


if __name__ == "__main__":
    B = 2
    NUM_PATCHES = 8
    K = IN_FEATURES
    N = PROJECTION_DIM

    key = jax.random.PRNGKey(0)
    k_x, k_w, k_b, k_p, k_x2 = jax.random.split(key, 5)

    # nn.Linear-style params.  The module inits position_embedding to zeros,
    # but after training it is arbitrary, so use a random table to exercise it.
    bound = 1.0 / jnp.sqrt(jnp.float32(K))
    weight = jax.random.uniform(k_w, (N, K), jnp.float32, -bound, bound)
    bias = jax.random.uniform(k_b, (N,), jnp.float32, -bound, bound)
    pos_emb = 0.02 * jax.random.normal(k_p, (1, NUM_PATCHES, N), jnp.float32)

    patches = jax.random.normal(k_x, (B, NUM_PATCHES, K), jnp.float32)

    # One-time parameter prep (transpose + bf16 cast + bias fold).
    w_t, pos_plus_bias = prepare_patch_encoder_params(weight, bias, pos_emb)

    out = patch_encoder(patches, w_t, pos_plus_bias)
    out = jax.block_until_ready(out)
    assert out.shape == (B, NUM_PATCHES, N)

    def reference_bf16(x):
        xb = x.astype(jnp.bfloat16).astype(jnp.float32)
        wb = weight.astype(jnp.bfloat16).astype(jnp.float32)
        return jnp.einsum("bpk,nk->bpn", xb, wb) + bias[None, None, :] + pos_emb

    # Reference with the same bf16 input rounding (MXU accumulates in f32).
    assert jnp.allclose(out, reference_bf16(patches), atol=2e-3, rtol=2e-3)

    # Sanity check against the pure-f32 forward (looser tol due to bf16 inputs).
    ref_f32 = jnp.einsum("bpk,nk->bpn", patches, weight) + bias[None, None, :] + pos_emb
    assert jnp.allclose(out, ref_f32, atol=3e-2, rtol=3e-2)

    # Exercise the multi-block + masked partial-last-block path at small scale:
    # M = 40 rows, forced TILE_M = 16 -> grid of 3 steps with an 8-row tail.
    B2 = 5
    patches2 = jax.random.normal(k_x2, (B2, NUM_PATCHES, K), jnp.float32)
    out2 = patch_encoder(patches2, w_t, pos_plus_bias, tile_m=16)
    out2 = jax.block_until_ready(out2)
    assert out2.shape == (B2, NUM_PATCHES, N)
    assert jnp.allclose(out2, reference_bf16(patches2), atol=2e-3, rtol=2e-3)

    print("KERNEL_OK")
</pallas_src>

<mosaic_0001>
module attributes {stable_mosaic.version = 11 : i64} {
  func.func @patch_encoder_kernel(%arg0: i32, %arg1: memref<16x1152xf32, #tpu.memory_space<vmem>>, %arg2: memref<1152x128xbf16, #tpu.memory_space<vmem>>, %arg3: memref<16x128xf32, #tpu.memory_space<vmem>>, %arg4: memref<16x128xf32, #tpu.memory_space<vmem>>) attributes {dimension_semantics = [#tpu.dimension_semantics<parallel>], iteration_bounds = array<i64: 1>, scalar_prefetch = 0 : i64, scratch_operands = 0 : i64, tpu.core_type = #tpu.core_type<tc>, window_params = [{transform_indices = @transform_0, window_bounds = array<i64: 16, 1152>}, {pipeline_mode = #tpu.pipeline_mode<synchronous>, transform_indices = @transform_1, window_bounds = array<i64: 1152, 128>}, {pipeline_mode = #tpu.pipeline_mode<synchronous>, transform_indices = @transform_2, window_bounds = array<i64: 16, 128>}, {transform_indices = @transform_3, window_bounds = array<i64: 16, 128>}]} {
    %c0 = arith.constant 0 : index
    %c0_0 = arith.constant 0 : index
    %0 = vector.load %arg1[%c0, %c0_0] : memref<16x1152xf32, #tpu.memory_space<vmem>>, vector<16x1152xf32>
    %1 = arith.truncf %0 : vector<16x1152xf32> to vector<16x1152xbf16>
    %c0_1 = arith.constant 0 : index
    %c0_2 = arith.constant 0 : index
    %2 = vector.load %arg2[%c0_1, %c0_2] : memref<1152x128xbf16, #tpu.memory_space<vmem>>, vector<1152x128xbf16>
    %cst = arith.constant dense<0.000000e+00> : vector<16x128xf32>
    %3 = tpu.matmul %1, %2, %cst {dimension_numbers = #tpu.dot_dimension_numbers<[1], [0], [0], [1], [0, 0, 1, 1], [], []>} : vector<16x1152xbf16>, vector<1152x128xbf16>, vector<16x128xf32> -> vector<16x128xf32>
    %c0_3 = arith.constant 0 : index
    %c0_4 = arith.constant 0 : index
    %4 = vector.load %arg3[%c0_3, %c0_4] : memref<16x128xf32, #tpu.memory_space<vmem>>, vector<16x128xf32>
    %5 = arith.addf %3, %4 : vector<16x128xf32>
    %c0_5 = arith.constant 0 : index
    %c0_6 = arith.constant 0 : index
    %6 = vector.load %arg4[%c0_5, %c0_6] : memref<16x128xf32, #tpu.memory_space<vmem>>, vector<16x128xf32>
    tpu.vector_store %arg4[%c0_5, %c0_6], %5 {strides = array<i32>} : memref<16x128xf32, #tpu.memory_space<vmem>>, vector<16x128xf32>,
    return
  }
  func.func @transform_0(%arg0: i32) -> (i32, i32) {
    %c0_i32 = arith.constant 0 : i32
    %c0_i32_0 = arith.constant 0 : i32
    return %arg0, %c0_i32 : i32, i32
  }
  func.func @transform_1(%arg0: i32) -> (i32, i32) {
    %c0_i32 = arith.constant 0 : i32
    %c0_i32_0 = arith.constant 0 : i32
    %c0_i32_1 = arith.constant 0 : i32
    return %c0_i32, %c0_i32_0 : i32, i32
  }
  func.func @transform_2(%arg0: i32) -> (i32, i32) {
    %c0_i32 = arith.constant 0 : i32
    %c0_i32_0 = arith.constant 0 : i32
    %c0_i32_1 = arith.constant 0 : i32
    return %c0_i32, %c0_i32_0 : i32, i32
  }
  func.func @transform_3(%arg0: i32) -> (i32, i32) {
    %c0_i32 = arith.constant 0 : i32
    %c0_i32_0 = arith.constant 0 : i32
    return %arg0, %c0_i32 : i32, i32
  }
}

</mosaic_0001>

<bundles_post_ra>
// kernel: tpu_custom_call.1
= control target key start
LH: loop header
LB: loop body
LE: loop exit
PB: predicated region body
PF: predicated region fallthrough
CT: control target
= control target key end

     0   :  { %8 = vsyncpa [#allocation3], 0  ;;  %s1340_s0 = inlined_call_operand.hbm [shape: f32[16,1152], index: 0, kind: input, shape index: {}]   ;;  %s1341_s1 = inlined_call_operand.hbm [shape: bf16[1152,128], index: 1, kind: input, shape index: {}]   ;;  %s1342_s2 = inlined_call_operand.hbm [shape: f32[16,128], index: 2, kind: input, shape index: {}]   ;;  %s1343_s3 = inlined_call_operand.hbm [shape: f32[16,128], index: 3, kind: output, shape index: {}]  }
   0x1   :  { %9 = vsyncpa [#allocation6], 0 }
   0x2   :  { %10 = vsyncpa [#allocation4], 0  ;;  %s1254_s12 = smov [#allocation5]   ;;  %s1160_s16 = scalar_lea.hbm %s1341_s1, 9216 }
   0x3   :  { %s28_s13 = sshll.u32 %s1254_s12, 4  ;;  %p1161_p0 = scmp.ne.s32.totalorder %s1341_s1, %s1160_s16  ;;  %s29_s13 = int_to_ptr.vmem [resolvable:$true] %s28_s13 }
   0x4   :  { %p1164_p1 = scmp.lt.u32.totalorder %s1160_s16, %s1341_s1 }
   0x6   :  { %p1166_p2 = pnand %p1164_p1, %p1161_p0 }
   0x8   :  { %1169 = shalt.err (!%p1166_p2)
}
   0x9   :  { %s1170_s21 = scalar_lea.vmem %s29_s13, 9216  ;;  %p1175_p4 = scmp.lt.s32.totalorder %s29_s13, %s29_s13 }
   0xa   :  { %p1171_p3 = scmp.ne.s32.totalorder %s29_s13, %s1170_s21  ;;  %p1176_p5 = scmp.lt.s32.totalorder %s1170_s21, %s1170_s21 }
   0xc   :  { %p1177_p6 = por %p1176_p5, %p1175_p4 }
   0xe   :  { %p1178_p7 = pnand %p1177_p6, %p1171_p3 }
  0x10   :  { %1181 = shalt.err (!%p1178_p7)
}
  0x11   :  { %s1255_s22 = smov 64   ;;  %s1256_s23 = smov 4  }
  0x12   :  { %34 = dma.hbm_to_vmem [thread:$0]  %s1341_s1, 9216, %s29_s13, [#allocation6], %s1255_s22, %s1255_s22, %s1256_s23  }
  0x13   :  { %s1257_s26 = smov [#allocation2]   ;;  %s1182_s30 = scalar_lea.hbm %s1340_s0, 2304 }
  0x14   :  { %s16_s27 = sshll.u32 %s1257_s26, 4  ;;  %p1183_p8 = scmp.ne.s32.totalorder %s1340_s0, %s1182_s30  ;;  %s17_s27 = int_to_ptr.vmem [resolvable:$true] %s16_s27 }
  0x15   :  { %p1186_p9 = scmp.lt.u32.totalorder %s1182_s30, %s1340_s0 }
  0x17   :  { %p1188_p10 = pnand %p1186_p9, %p1183_p8 }
  0x19   :  { %1191 = shalt.err (!%p1188_p10)
}
  0x1a   :  { %s1192_s8 = scalar_lea.vmem %s17_s27, 2304  ;;  %p1197_p12 = scmp.lt.s32.totalorder %s17_s27, %s17_s27 }
  0x1b   :  { %p1193_p11 = scmp.ne.s32.totalorder %s17_s27, %s1192_s8  ;;  %p1198_p13 = scmp.lt.s32.totalorder %s1192_s8, %s1192_s8 }
  0x1d   :  { %p1199_p0 = por %p1198_p13, %p1197_p12 }
  0x1f   :  { %p1200_p1 = pnand %p1199_p0, %p1193_p11 }
  0x21   :  { %1203 = shalt.err (!%p1200_p1)
}
  0x22   :  { %s1258_s1 = smov 1152   ;;  %s1259_s9 = smov 72  }
  0x23   :  { %22 = dma.hbm_to_vmem [thread:$0]  %s1340_s0, 2304, %s17_s27, [#allocation3], %s1258_s1, %s1258_s1, %s1259_s9  }
  0x24   :  { %s1260_s12 = smov [#allocation7]   ;;  %s1204_s16 = scalar_lea.hbm %s1342_s2, 256 }
  0x25   :  { %s40_s13 = sshll.u32 %s1260_s12, 4  ;;  %p1205_p2 = scmp.ne.s32.totalorder %s1342_s2, %s1204_s16  ;;  %s41_s13 = int_to_ptr.vmem [resolvable:$true] %s40_s13 }
  0x26   :  { %p1208_p3 = scmp.lt.u32.totalorder %s1204_s16, %s1342_s2 }
  0x28   :  { %p1210_p4 = pnand %p1208_p3, %p1205_p2 }
  0x2a   :  { %1213 = shalt.err (!%p1210_p4)
}
  0x2b   :  { %s1214_s21 = scalar_lea.vmem %s41_s13, 256  ;;  %p1219_p6 = scmp.lt.s32.totalorder %s41_s13, %s41_s13 }
  0x2c   :  { %p1215_p5 = scmp.ne.s32.totalorder %s41_s13, %s1214_s21  ;;  %p1220_p7 = scmp.lt.s32.totalorder %s1214_s21, %s1214_s21 }
  0x2e   :  { %p1221_p8 = por %p1220_p7, %p1219_p6 }
  0x30   :  { %p1222_p9 = pnand %p1221_p8, %p1215_p5 }
  0x32   :  { %1225 = shalt.err (!%p1222_p9)
}
  0x33   :  { %s1261_s0 = smov 128   ;;  %s1262_s22 = smov 8  }
  0x34   :  { %46 = dma.hbm_to_vmem [thread:$0]  %s1342_s2, 256, %s41_s13, [#allocation6], %s1261_s0, %s1261_s0, %s1262_s22  }
  0x35   :  { %1248 = dma.done.wait [#allocation3], 2304  }
  0x36   :  { %1249 = vsyncadd [#allocation3], 4294964992 }
  0x37   :  { %1250 = dma.done.wait [#allocation6], 9472  }
  0x38   :  { %1251 = vsyncadd [#allocation6], 4294957824  ;;  %v1088_v0 = vld [vmem:[#allocation5 + $0x40] sm:$0xff]   ;;  %v1092_v4 = vld [vmem:[#allocation5 + $0x48] sm:$0xff]   ;;  %vm1264_vm0 = vmmov 0   ;;  %s1265_s2 = smov [#allocation8]  }
  0x39   :  { %v1089_v1 = vld [vmem:[#allocation5] sm:$0xff]   ;;  %959 = vmatprep.subr.bf16.mxu0 %v1088_v0  ;;  %v1093_v5 = vld [vmem:[#allocation5 + $0x8] sm:$0xff]   ;;  %v1096_v8 = vld [vmem:[#allocation5 + $0x50] sm:$0xff]   ;;  %s874_s25 = sshll.u32 %s1265_s2, 4  ;;  %s875_s25 = int_to_ptr.vmem [resolvable:$true] %s874_s25 }
  0x3a   :  { %v1090_v2 = vld [vmem:[#allocation5 + $0xc0] sm:$0xff]   ;;  %960 = vmatpush3.bf16.msra.mxu0 %v1089_v1  ;;  %v1094_v6 = vld [vmem:[#allocation5 + $0xc8] sm:$0xff]   ;;  %v1097_v9 = vld [vmem:[#allocation5 + $0x10] sm:$0xff]   ;;  %s1226_s26 = scalar_lea.vmem %s875_s25, 256  ;;  %p1231_p11 = scmp.lt.s32.totalorder %s875_s25, %s875_s25 }
  0x3b   :  { %v1091_v3 = vld [vmem:[#allocation5 + $0x80] sm:$0xff]   ;;  %981 = vmatprep.subr.bf16.mxu1 %v1090_v2  ;;  %961 = vmatprep.subr.bf16.mxu0 %v1092_v4  ;;  %v1095_v7 = vld [vmem:[#allocation5 + $0x88] sm:$0xff]   ;;  %v1098_v10 = vld [vmem:[#allocation5 + $0xd0] sm:$0xff]   ;;  %p1227_p10 = scmp.ne.s32.totalorder %s875_s25, %s1226_s26  ;;  %p1232_p12 = scmp.lt.s32.totalorder %s1226_s26, %s1226_s26 }
  0x3c   :  { %982 = vmatpush3.bf16.msra.mxu1 %v1091_v3  ;;  %v1099_v11 = vld [vmem:[#allocation5 + $0x90] sm:$0xff]   ;;  %v1100_v12 = vld [vmem:[#allocation5 + $0x58] sm:$0xff]   ;;  %v1104_v16 = vld [vmem:[#allocation5 + $0x60] sm:$0xff]  }
  0x3d   :  { %983 = vmatprep.subr.bf16.mxu1 %v1094_v6  ;;  %v1101_v13 = vld [vmem:[#allocation5 + $0x18] sm:$0xff]   ;;  %v1105_v17 = vld [vmem:[#allocation5 + $0x20] sm:$0xff]   ;;  %v1108_v20 = vld [vmem:[#allocation5 + $0x68] sm:$0xff]   ;;  %p1233_p13 = por %p1232_p12, %p1231_p11 }
  0x3e   :  { %962 = vmatpush3.bf16.msra.mxu0 %v1093_v5  ;;  %v1102_v14 = vld [vmem:[#allocation5 + $0xd8] sm:$0xff]   ;;  %v1106_v18 = vld [vmem:[#allocation5 + $0xe0] sm:$0xff]   ;;  %v1109_v21 = vld [vmem:[#allocation5 + $0x28] sm:$0xff]  }
  0x3f   :  { %963 = vmatprep.subr.bf16.mxu0 %v1096_v8  ;;  %v1103_v15 = vld [vmem:[#allocation5 + $0x98] sm:$0xff]   ;;  %v1107_v19 = vld [vmem:[#allocation5 + $0xa0] sm:$0xff]   ;;  %v1110_v22 = vld [vmem:[#allocation5 + $0xe8] sm:$0xff]   ;;  %p1234_p0 = pnand %p1233_p13, %p1227_p10 }
  0x40   :  { %984 = vmatpush3.bf16.msra.mxu1 %v1095_v7  ;;  %v1111_v23 = vld [vmem:[#allocation5 + $0xa8] sm:$0xff]   ;;  %v1112_v24 = vld [vmem:[#allocation5 + $0x70] sm:$0xff]   ;;  %v1116_v28 = vld [vmem:[#allocation5 + $0x78] sm:$0xff]  }
  0x41   :  { %985 = vmatprep.subr.bf16.mxu1 %v1098_v10  ;;  %v1113_v25 = vld [vmem:[#allocation5 + $0x30] sm:$0xff]   ;;  %v1117_v29 = vld [vmem:[#allocation5 + $0x38] sm:$0xff]   ;;  %v67_v32 = vld [vmem:[#allocation2 + $0x50] sm:$0xff] }
  0x42   :  { %964 = vmatpush3.bf16.msra.mxu0 %v1097_v9  ;;  %v1114_v26 = vld [vmem:[#allocation5 + $0xf0] sm:$0xff]   ;;  %v1118_v30 = vld [vmem:[#allocation5 + $0xf8] sm:$0xff]   ;;  %v1120_v38 = vld [vmem:[#allocation5 + $0x140] sm:$0xff]  }
  0x43   :  { %965 = vmatprep.subr.bf16.mxu0 %v1100_v12  ;;  %v1115_v27 = vld [vmem:[#allocation5 + $0xb0] sm:$0xff]   ;;  %v58_v31 = vld [vmem:[#allocation2 + $0x8] sm:$0xff]  ;;  %v60_v39 = vld [vmem:[#allocation2 + $0x18] sm:$0xff] }
  0x44   :  { %986 = vmatpush3.bf16.msra.mxu1 %v1099_v11  ;;  %v76_v33 = vpack.c.bf16 %v67_v32, %v58_v31  ;;  %v1119_v34 = vld [vmem:[#allocation5 + $0xb8] sm:$0xff]   ;;  %v57_v35 = vld [vmem:[#allocation2] sm:$0xff]  ;;  %v1121_v42 = vld [vmem:[#allocation5 + $0x100] sm:$0xff]  }
  0x45   :  { %987 = vmatprep.subr.bf16.mxu1 %v1102_v14  ;;  %v66_v36 = vld [vmem:[#allocation2 + $0x48] sm:$0xff]  ;;  %v69_v40 = vld [vmem:[#allocation2 + $0x60] sm:$0xff]  ;;  %v59_v43 = vld [vmem:[#allocation2 + $0x10] sm:$0xff] }
  0x46   :  { %966 = vmatpush3.bf16.msra.mxu0 %v1101_v13  ;;  %694 = vmatprep.mubr.bf16.mxu0 %v76_v33  ;;  %v75_v37 = vpack.c.bf16 %v66_v36, %v57_v35  ;;  %v78_v41 = vpack.c.bf16 %v69_v40, %v60_v39  ;;  %v68_v44 = vld [vmem:[#allocation2 + $0x58] sm:$0xff]  ;;  %v1122_v46 = vld [vmem:[#allocation5 + $0x1c0] sm:$0xff]   ;;  %v1128_v52 = vld [vmem:[#allocation5 + $0x150] sm:$0xff]  }
  0x47   :  { %967 = vmatprep.subr.bf16.mxu0 %v1104_v16  ;;  %v77_v45 = vpack.c.bf16 %v68_v44, %v59_v43  ;;  %v1123_v47 = vld [vmem:[#allocation5 + $0x180] sm:$0xff]   ;;  %v1124_v48 = vld [vmem:[#allocation5 + $0x148] sm:$0xff]   ;;  %v1129_v53 = vld [vmem:[#allocation5 + $0x110] sm:$0xff]  }
  0x48   :  { %988 = vmatpush3.bf16.msra.mxu1 %v1103_v15  ;;  %735 = vmatprep.mubr.bf16.mxu1 %v78_v41  ;;  %v1125_v49 = vld [vmem:[#allocation5 + $0x108] sm:$0xff]   ;;  %v1130_v54 = vld [vmem:[#allocation5 + $0x1d0] sm:$0xff]   ;;  %v1132_v56 = vld [vmem:[#allocation5 + $0x158] sm:$0xff]  }
  0x49   :  { %989 = vmatprep.subr.bf16.mxu1 %v1106_v18  ;;  %v1126_v50 = vld [vmem:[#allocation5 + $0x1c8] sm:$0xff]   ;;  %v1131_v55 = vld [vmem:[#allocation5 + $0x190] sm:$0xff]   ;;  %v1133_v57 = vld [vmem:[#allocation5 + $0x118] sm:$0xff]  }
  0x4a   :  { %968 = vmatpush3.bf16.msra.mxu0 %v1105_v17  ;;  %v1127_v51 = vld [vmem:[#allocation5 + $0x188] sm:$0xff]   ;;  %v1134_v58 = vld [vmem:[#allocation5 + $0x1d8] sm:$0xff]   ;;  %v1136_v60 = vld [vmem:[#allocation5 + $0x160] sm:$0xff]   ;;  %v1263_v17 = vmov 0.0  }
  0x4b   :  { %969 = vmatprep.subr.bf16.mxu0 %v1108_v20  ;;  %v1135_v59 = vld [vmem:[#allocation5 + $0x198] sm:$0xff]   ;;  %v1137_v61 = vld [vmem:[#allocation5 + $0x120] sm:$0xff]   ;;  %v1140_v0 = vld [vmem:[#allocation5 + $0x168] sm:$0xff]  }
  0x4c   :  { %990 = vmatpush3.bf16.msra.mxu1 %v1107_v19  ;;  %v1138_v62 = vld [vmem:[#allocation5 + $0x1e0] sm:$0xff]   ;;  %v1141_v1 = vld [vmem:[#allocation5 + $0x128] sm:$0xff]   ;;  %v1144_v4 = vld [vmem:[#allocation5 + $0x170] sm:$0xff]  }
  0x4d   :  { %991 = vmatprep.subr.bf16.mxu1 %v1110_v22  ;;  %v1139_v63 = vld [vmem:[#allocation5 + $0x1a0] sm:$0xff]   ;;  %v1142_v2 = vld [vmem:[#allocation5 + $0x1e8] sm:$0xff]   ;;  %v1145_v5 = vld [vmem:[#allocation5 + $0x130] sm:$0xff]  }
  0x4e   :  { %970 = vmatpush3.bf16.msra.mxu0 %v1109_v21  ;;  %v1143_v3 = vld [vmem:[#allocation5 + $0x1a8] sm:$0xff]   ;;  %v1146_v6 = vld [vmem:[#allocation5 + $0x1f0] sm:$0xff]   ;;  %v1148_v8 = vld [vmem:[#allocation5 + $0x178] sm:$0xff]  }
  0x4f   :  { %971 = vmatprep.subr.bf16.mxu0 %v1112_v24  ;;  %v1147_v7 = vld [vmem:[#allocation5 + $0x1b0] sm:$0xff]   ;;  %v1149_v9 = vld [vmem:[#allocation5 + $0x138] sm:$0xff]   ;;  %v71_v12 = vld [vmem:[#allocation2 + $0x70] sm:$0xff] }
  0x50   :  { %992 = vmatpush3.bf16.msra.mxu1 %v1111_v23  ;;  %v1150_v10 = vld [vmem:[#allocation5 + $0x1f8] sm:$0xff]   ;;  %v61_v15 = vld [vmem:[#allocation2 + $0x20] sm:$0xff]  ;;  %v64_v19 = vld [vmem:[#allocation2 + $0x38] sm:$0xff] }
  0x51   :  { %993 = vmatprep.subr.bf16.mxu1 %v1114_v26  ;;  %v62_v11 = vld [vmem:[#allocation2 + $0x28] sm:$0xff]  ;;  %v73_v20 = vld [vmem:[#allocation2 + $0x80] sm:$0xff]  ;;  %v1152_v22 = vld [vmem:[#allocation5 + $0x200] sm:$0xff]  }
  0x52   :  { %972 = vmatpush3.bf16.msra.mxu0 %v1113_v25  ;;  %v80_v13 = vpack.c.bf16 %v71_v12, %v62_v11  ;;  %v1151_v14 = vld [vmem:[#allocation5 + $0x1b8] sm:$0xff]   ;;  %v82_v21 = vpack.c.bf16 %v73_v20, %v64_v19  ;;  %v63_v23 = vld [vmem:[#allocation2 + $0x30] sm:$0xff]  ;;  %v72_v24 = vld [vmem:[#allocation2 + $0x78] sm:$0xff] }
  0x53   :  { %973 = vmatprep.subr.bf16.mxu0 %v1116_v28  ;;  %v70_v16 = vld [vmem:[#allocation2 + $0x68] sm:$0xff]  ;;  %v81_v25 = vpack.c.bf16 %v72_v24, %v63_v23  ;;  %v1153_v26 = vld [vmem:[#allocation5 + $0x208] sm:$0xff]   ;;  %v1158_v31 = vld [vmem:[#allocation5 + $0x230] sm:$0xff]  }
  0x54   :  { %994 = vmatpush3.bf16.msra.mxu1 %v1115_v27  ;;  %v79_v18 = vpack.c.bf16 %v70_v16, %v61_v15  ;;  %v1154_v27 = vld [vmem:[#allocation5 + $0x210] sm:$0xff]   ;;  %v1155_v28 = vld [vmem:[#allocation5 + $0x218] sm:$0xff]  }
  0x55   :  { %995 = vmatprep.subr.bf16.mxu1 %v1118_v30  ;;  %v1157_v30 = vld [vmem:[#allocation5 + $0x228] sm:$0xff]   ;;  %v1159_v32 = vld [vmem:[#allocation5 + $0x238] sm:$0xff]   ;;  %v65_v33 = vld [vmem:[#allocation2 + $0x40] sm:$0xff] }
  0x56   :  { %974 = vmatpush3.bf16.msra.mxu0 %v1117_v29  ;;  %v1156_v29 = vld [vmem:[#allocation5 + $0x220] sm:$0xff]  }
  0x57   :  { %1003 = vmatprep.subr.bf16.mxu0 %v1120_v38 }
  0x58   :  { %996 = vmatpush3.bf16.msra.mxu1 %v1119_v34  ;;  %v74_v34 = vld [vmem:[#allocation2 + $0x88] sm:$0xff] }
  0x59   :  { %695 = vmatmul.mubr.bf16.vlgmr.msra.gmra.mrb[0].mxu0 %v75_v37  ;;  %1025 = vmatprep.subr.bf16.mxu1 %v1122_v46  ;;  %v83_v35 = vpack.c.bf16 %v74_v34, %v65_v33  ;;  %v228_v37 = vld [vmem:[#allocation7] sm:$0xff] }
  0x5a   :  { %1004 = vmatpush3.bf16.msra.mxu0 %v1121_v42  ;;  %776 = vmatprep.mubr.bf16.mxu0 %v80_v13  ;;  %v229_v42 = vld [vmem:[#allocation7 + $0x8] sm:$0xff] }
  0x5b   :  { %736 = vmatmul.mubr.bf16.vlgmr.msra.gmra.mrb[0].mxu1 %v77_v45  ;;  %1005 = vmatprep.subr.bf16.mxu0 %v1124_v48 }
  0x5c   :  { %1026 = vmatpush3.bf16.msra.mxu1 %v1123_v47  ;;  %817 = vmatprep.mubr.bf16.mxu1 %v82_v21 }
  0x5d   :  { %1027 = vmatprep.subr.bf16.mxu1 %v1126_v50 }
  0x5e   :  { %1006 = vmatpush3.bf16.msra.mxu0 %v1125_v49 }
  0x5f   :  { %1007 = vmatprep.subr.bf16.mxu0 %v1128_v52 }
  0x60   :  { %1028 = vmatpush3.bf16.msra.mxu1 %v1127_v51 }
  0x61   :  { %1029 = vmatprep.subr.bf16.mxu1 %v1130_v54 }
  0x62   :  { %1008 = vmatpush3.bf16.msra.mxu0 %v1129_v53 }
  0x63   :  { %1009 = vmatprep.subr.bf16.mxu0 %v1132_v56 }
  0x64   :  { %1030 = vmatpush3.bf16.msra.mxu1 %v1131_v55 }
  0x65   :  { %1031 = vmatprep.subr.bf16.mxu1 %v1134_v58 }
  0x66   :  { %1010 = vmatpush3.bf16.msra.mxu0 %v1133_v57 }
  0x67   :  { %1011 = vmatprep.subr.bf16.mxu0 %v1136_v60 }
  0x68   :  { %1032 = vmatpush3.bf16.msra.mxu1 %v1135_v59 }
  0x69   :  { %1033 = vmatprep.subr.bf16.mxu1 %v1138_v62 }
  0x6a   :  { %1012 = vmatpush3.bf16.msra.mxu0 %v1137_v61 }
  0x6b   :  { %1013 = vmatprep.subr.bf16.mxu0 %v1140_v0 }
  0x6c   :  { %1034 = vmatpush3.bf16.msra.mxu1 %v1139_v63 }
  0x6d   :  { %1035 = vmatprep.subr.bf16.mxu1 %v1142_v2 }
  0x6e   :  { %1014 = vmatpush3.bf16.msra.mxu0 %v1141_v1 }
  0x6f   :  { %1015 = vmatprep.subr.bf16.mxu0 %v1144_v4 }
  0x70   :  { %1036 = vmatpush3.bf16.msra.mxu1 %v1143_v3 }
  0x71   :  { %1037 = vmatprep.subr.bf16.mxu1 %v1146_v6 }
  0x72   :  { %1016 = vmatpush3.bf16.msra.mxu0 %v1145_v5 }
  0x73   :  { %1017 = vmatprep.subr.bf16.mxu0 %v1148_v8 }
  0x74   :  { %1038 = vmatpush3.bf16.msra.mxu1 %v1147_v7 }
  0x75   :  { %1039 = vmatprep.subr.bf16.mxu1 %v1150_v10 }
  0x76   :  { %1018 = vmatpush3.bf16.msra.mxu0 %v1149_v9 }
  0x77   :  { %1056 = vmatprep.subr.bf16.mxu0 %v1263_v17 }
  0x78   :  { %1040 = vmatpush3.bf16.msra.mxu1 %v1151_v14 }
  0x79   :  { %777 = vmatmul.mubr.bf16.vlgmr.msra.gmra.mrb[4].mxu0 %v79_v18 }
  0x7a   :  { %1057 = vmatpush3.bf16.msra.mxu0 %v1152_v22  ;;  %1072 = vmatprep.mubr.msk.bf16.mxu0 %vm1264_vm0, %v1263_v17 }
  0x7b   :  { %1058 = vmatprep.subr.bf16.mxu0 %v1263_v17  ;;  %818 = vmatmul.mubr.bf16.vlgmr.msra.gmra.mrb[4].mxu1 %v81_v25 }
  0x7e   :  { %1059 = vmatpush3.bf16.msra.mxu0 %v1153_v26 }
  0x7f   :  { %1060 = vmatprep.subr.bf16.mxu0 %v1263_v17 }
  0x82   :  { %1061 = vmatpush3.bf16.msra.mxu0 %v1154_v27 }
  0x83   :  { %1062 = vmatprep.subr.bf16.mxu0 %v1263_v17 }
  0x86   :  { %1063 = vmatpush3.bf16.msra.mxu0 %v1155_v28 }
  0x87   :  { %1064 = vmatprep.subr.bf16.mxu0 %v1263_v17 }
  0x8a   :  { %1065 = vmatpush3.bf16.msra.mxu0 %v1156_v29 }
  0x8b   :  { %1066 = vmatprep.subr.bf16.mxu0 %v1263_v17 }
  0x8e   :  { %1067 = vmatpush3.bf16.msra.mxu0 %v1157_v30 }
  0x8f   :  { %1068 = vmatprep.subr.bf16.mxu0 %v1263_v17 }
  0x92   :  { %1069 = vmatpush3.bf16.msra.mxu0 %v1158_v31 }
  0x93   :  { %1070 = vmatprep.subr.bf16.mxu0 %v1263_v17 }
  0x96   :  { %1071 = vmatpush3.bf16.msra.mxu0 %v1159_v32 }
  0x99   :  { %1073 = vmatmul.mubr.bf16.vlgmr.msra.gmra.mrb[8].mxu0 %v83_v35 }
 0x12c   :  { %v975_v36 = vpop.f32.mrb[0].mxu0 }
 0x12d   :  { %v976_v38 = vpop.f32.mrb[1].mxu0 }
 0x12e   :  { %v977_v39 = vadd.f32 %v976_v38, %v975_v36  ;;  %v978_v40 = vpop.f32.mrb[2].mxu0  ;;  %v997_v41 = vpop.f32.mrb[0].mxu1 }
 0x12f   :  { %v979_v43 = vpop.f32.mrb[3].mxu0  ;;  %v998_v46 = vpop.f32.mrb[1].mxu1 }
 0x130   :  { %v697_v44 = vadd.f32 %v977_v39, %v228_v37  ;;  %v980_v45 = vadd.f32 %v979_v43, %v978_v40  ;;  %v999_v47 = vadd.f32 %v998_v46, %v997_v41  ;;  %v1000_v48 = vpop.f32.mrb[2].mxu1 }
 0x131   :  { %v1001_v50 = vpop.f32.mrb[3].mxu1 }
 0x132   :  { %v700_v49 = vadd.f32 %v980_v45, %v229_v42  ;;  %v738_v51 = vadd.f32 %v999_v47, %v697_v44  ;;  %v1002_v52 = vadd.f32 %v1001_v50, %v1000_v48 }
 0x134   :  { %v741_v53 = vadd.f32 %v1002_v52, %v700_v49 }
 0x14c   :  { %v1019_v54 = vpop.f32.mrb[4].mxu0 }
 0x14d   :  { %v1020_v55 = vpop.f32.mrb[5].mxu0 }
 0x14e   :  { %v1021_v56 = vadd.f32 %v1020_v55, %v1019_v54  ;;  %v1022_v57 = vpop.f32.mrb[6].mxu0  ;;  %v1041_v58 = vpop.f32.mrb[4].mxu1 }
 0x14f   :  { %v1023_v59 = vpop.f32.mrb[7].mxu0  ;;  %v1042_v62 = vpop.f32.mrb[5].mxu1 }
 0x150   :  { %v779_v60 = vadd.f32 %v1021_v56, %v738_v51  ;;  %v1024_v61 = vadd.f32 %v1023_v59, %v1022_v57  ;;  %v1043_v63 = vadd.f32 %v1042_v62, %v1041_v58  ;;  %v1044_v0 = vpop.f32.mrb[6].mxu1 }
 0x151   :  { %v1045_v2 = vpop.f32.mrb[7].mxu1 }
 0x152   :  { %v782_v1 = vadd.f32 %v1024_v61, %v741_v53  ;;  %v1046_v3 = vadd.f32 %v1045_v2, %v1044_v0  ;;  %v820_v4 = vadd.f32 %v1043_v63, %v779_v60 }
 0x154   :  { %v823_v5 = vadd.f32 %v1046_v3, %v782_v1 }
 0x16c   :  { %v860_v6 = vpop.f32.mrb[8].mxu0 }
 0x16d   :  { %v861_v7 = vadd.f32 %v860_v6, %v820_v4  ;;  %v1074_v8 = vpop.f32.mrb[9].mxu0 }
 0x16e   :  { %v863_v9 = vpop.f32.mrb[10].mxu0 }
 0x16f   :  { %867 = vst [vmem:[#allocation8] sm:$0xff] %v861_v7  ;;  %v864_v10 = vadd.f32 %v863_v9, %v823_v5  ;;  %v1075_v11 = vpop.f32.mrb[11].mxu0 }
 0x171   :  { %868 = vst [vmem:[#allocation8 + $0x8] sm:$0xff] %v864_v10 }
 0x172   :  { %1237 = shalt.err (!%p1234_p0)
}
 0x173   :  { %s1238_s29 = scalar_lea.hbm %s1343_s3, 256 }
 0x174   :  { %p1239_p1 = scmp.ne.s32.totalorder %s1343_s3, %s1238_s29  ;;  %p1242_p2 = scmp.lt.u32.totalorder %s1238_s29, %s1343_s3 }
 0x176   :  { %p1244_p3 = pnand %p1242_p2, %p1239_p1 }
 0x178   :  { %1247 = shalt.err (!%p1244_p3)
}
 0x179   :  { %880 = dma.vmem_to_hbm [thread:$0]  %s875_s25, 256, %s1343_s3, [#allocation4], %s1261_s0, %s1261_s0, %s1262_s22  }
 0x17a   :  { %1252 = dma.done.wait [#allocation4], 256  }
 0x17b   :  { %1253 = vsyncadd [#allocation4], 4294967040 }
 0x17c   :  { %884 = vsyncpa [#allocation3], 1 }
 0x17d   :  { %885 = vsyncpa [#allocation6], 1 }
 0x17e   :  { %886 = vsyncpa [#allocation4], 1 }

</bundles_post_ra>
